<compile_context>
chip_gen: v6e
topology: v6e:2x2x1
jax: 0.10.0
libtpu: 0.0.40
codegen_flags: <defaults>
</compile_context>

<pallas_src>
import jax
import jax.numpy as jnp
from jax.experimental import pallas as pl
from jax.experimental.pallas import tpu as pltpu


def attention_kernel(x_ref, w1_ref, b1_ref, w2_ref, out_ref, score_ref):
    bt, n, d_in = x_ref.shape          # block shape (B_TILE, N, D_in)
    d_out = w1_ref.shape[1]

    x = x_ref[...]                     # (BT, N, D_in), activation dtype
    # Collapse (BT, N) -> rows for one big MXU matmul. Layout-free when N % 8 == 0;
    # still correct otherwise (just a relayout copy).
    x2d = x.reshape(bt * n, d_in)

    # h = tanh(x @ W1 + b1)                              -> (BT*N, D_out), f32
    h = jnp.tanh(
        jnp.dot(x2d, w1_ref[...], preferred_element_type=jnp.float32)
        + b1_ref[...].astype(jnp.float32)               # (1, D_out) broadcast
    )

    # Context projection to one scalar per position: broadcast-mul + lane reduce
    # (avoids a 1-wide MXU matmul). The PyTorch `+ b2` is intentionally omitted:
    # softmax is shift-invariant, so it affects neither output.  -> (BT, N)
    s = jnp.sum(h.reshape(bt, n, d_out) * w2_ref[...].astype(jnp.float32), axis=-1)

    # Numerically stable softmax over the sequence axis (PyTorch dim=1), exact divide.
    m = jnp.max(s, axis=-1, keepdims=True)
    e = jnp.exp(s - m)
    p = e / jnp.sum(e, axis=-1, keepdims=True)          # (BT, N) f32

    # out[b, d] = sum_n p[b, n] * x[b, n, d]  — VPU multiply + sublane reduce, f32 accum.
    ctx = jnp.sum(x.astype(jnp.float32) * p[..., None], axis=1)   # (BT, D_in)

    out_ref[...] = ctx.astype(out_ref.dtype)
    score_ref[...] = p.astype(score_ref.dtype)


def _pick_batch_tile(B, N, D_in, D_out, itemsize, budget_bytes):
    """Largest batch tile whose per-step working set fits the VMEM budget."""
    per_row = (
        2 * N * D_in * itemsize        # double-buffered x tile
        + 2 * (D_in + N) * itemsize    # double-buffered output slabs
        + N * D_out * 4                # f32 tanh intermediate h
        + 2 * (N + D_in) * 4           # f32 score / context temporaries
    )
    bt = max(1, int(budget_bytes // per_row))
    bt = min(bt, B)
    # Guarantee >=2 grid steps for larger batches so ("parallel",) can use both
    # TensorCores on v7x (and keep pipeline overlap) instead of a 1-step grid.
    if B >= 16 and bt * 2 > B:
        bt = -(-B // 2)
    if bt >= 8:
        bt = (bt // 8) * 8             # sublane-aligned output slabs
    elif bt < B:
        bt = min(8, B)                 # avoid tiny, non-8-aligned partial tiles
    return bt


def attention_forward(x, w1, b1, w2, b2=None, *, b_tile=None,
                      vmem_budget_bytes=24 * 1024 * 1024):
    """x: (B, N, D_in); w1: (D_in, D_out); b1: (D_out,); w2: (D_out, 1); b2: (1,).

    b2 is accepted for API parity but not used: softmax shift-invariance makes it a
    mathematical no-op for both outputs.
    """
    del b2
    B, N, D_in = x.shape
    D_out = w1.shape[1]
    itemsize = jnp.dtype(x.dtype).itemsize

    # Tiny weights: cast to the activation dtype (bf16 path streams everything bf16);
    # accumulation inside the kernel is always f32.
    w1_c = w1.astype(x.dtype)
    b1_2d = b1.reshape(1, D_out).astype(x.dtype)
    w2_row = w2.reshape(1, D_out).astype(x.dtype)   # (D_out, 1) -> row vector for VPU

    if b_tile is None:
        bt = _pick_batch_tile(B, N, D_in, D_out, itemsize, vmem_budget_bytes)
    else:
        bt = max(1, min(int(b_tile), B))

    # Non-dividing batch: masked boundary block (no jnp.pad copy of x in HBM).
    grid = (pl.cdiv(B, bt),)

    est_bytes = (
        bt * (2 * N * D_in + 2 * (D_in + N)) * itemsize   # x + outputs (double-buffered)
        + bt * N * D_out * 4                               # f32 intermediate
        + (D_in * D_out + 2 * D_out) * itemsize            # resident weights
    )
    # Raise the scoped-VMEM cap (v5e default is only 16 MiB) but stay well under v7x's
    # 64 MiB physical VMEM.
    vmem_limit = int(min(max(2 * est_bytes, 32 << 20), 48 << 20))

    out, score = pl.pallas_call(
        attention_kernel,
        out_shape=(
            jax.ShapeDtypeStruct((B, D_in), x.dtype),     # out
            jax.ShapeDtypeStruct((B, N), x.dtype),        # attn_score
        ),
        grid_spec=pltpu.PrefetchScalarGridSpec(
            num_scalar_prefetch=0,
            grid=grid,
            in_specs=[
                pl.BlockSpec((bt, N, D_in), lambda b: (b, 0, 0)),   # x tile (streamed)
                pl.BlockSpec((D_in, D_out), lambda b: (0, 0)),       # W1 (VMEM-resident)
                pl.BlockSpec((1, D_out), lambda b: (0, 0)),          # b1 (resident)
                pl.BlockSpec((1, D_out), lambda b: (0, 0)),          # W2 row (resident)
            ],
            out_specs=(
                pl.BlockSpec((bt, D_in), lambda b: (b, 0)),          # dense slab store
                pl.BlockSpec((bt, N), lambda b: (b, 0)),             # dense slab store
            ),
        ),
        compiler_params=pltpu.CompilerParams(
            dimension_semantics=("parallel",),     # independent batch tiles -> megacore
            vmem_limit_bytes=vmem_limit,
        ),
    )(x, w1_c, b1_2d, w2_row)

    return out, score


def attention_reference(x, w1, b1, w2, b2):
    xf = x.astype(jnp.float32)
    hi = jax.lax.Precision.HIGHEST
    h = jnp.tanh(jnp.einsum("bnd,de->bne", xf, w1.astype(jnp.float32), precision=hi) + b1)
    s = (jnp.einsum("bne,eo->bno", h, w2.astype(jnp.float32), precision=hi) + b2).squeeze(-1)
    score = jax.nn.softmax(s, axis=1)
    out = jnp.einsum("bnd,bn->bd", xf, score, precision=hi)
    return out, score


if __name__ == "__main__":
    B, N, D_in, D_out = 2, 8, 32, 16

    key = jax.random.PRNGKey(0)
    kx, kw1, kb1, kw2, kb2 = jax.random.split(key, 5)

    x = jax.random.normal(kx, (B, N, D_in), dtype=jnp.float32)
    # nn.Linear(in_dim, out_dim) weights stored pre-transposed as (in, out).
    bound1 = 1.0 / jnp.sqrt(D_in)
    w1 = jax.random.uniform(kw1, (D_in, D_out), jnp.float32, -bound1, bound1)
    b1 = jax.random.uniform(kb1, (D_out,), jnp.float32, -bound1, bound1)
    bound2 = 1.0 / jnp.sqrt(D_out)
    w2 = jax.random.uniform(kw2, (D_out, 1), jnp.float32, -bound2, bound2)
    b2 = jax.random.uniform(kb2, (1,), jnp.float32, -bound2, bound2)

    # --- Case 1: single-tile f32 path ------------------------------------------------
    out, score = attention_forward(x, w1, b1, w2, b2)
    out, score = jax.block_until_ready((out, score))
    ref_out, ref_score = attention_reference(x, w1, b1, w2, b2)
    assert out.shape == (B, D_in) and score.shape == (B, N)
    # Tolerance covers MXU f32-via-bf16-pass rounding on real hardware; interpret/exact
    # paths are far tighter than this.
    assert jnp.allclose(out, ref_out, atol=2e-3, rtol=2e-3)
    assert jnp.allclose(score, ref_score, atol=2e-3, rtol=2e-3)

    # --- Case 2: multi-step grid with a non-dividing batch (masked tail, no jnp.pad) --
    B2 = 10
    x2 = jax.random.normal(jax.random.PRNGKey(1), (B2, N, D_in), dtype=jnp.float32)
    out2, score2 = attention_forward(x2, w1, b1, w2, b2, b_tile=8)
    out2, score2 = jax.block_until_ready((out2, score2))
    ref_out2, ref_score2 = attention_reference(x2, w1, b1, w2, b2)
    assert out2.shape == (B2, D_in) and score2.shape == (B2, N)
    assert jnp.allclose(out2, ref_out2, atol=2e-3, rtol=2e-3)
    assert jnp.allclose(score2, ref_score2, atol=2e-3, rtol=2e-3)

    # --- Case 3: bf16 activation streaming path --------------------------------------
    B3 = 4
    x3 = jax.random.normal(jax.random.PRNGKey(2), (B3, N, D_in), dtype=jnp.float32)
    x3_bf16 = x3.astype(jnp.bfloat16)
    out3, score3 = attention_forward(x3_bf16, w1, b1, w2, b2)
    out3, score3 = jax.block_until_ready((out3, score3))
    ref_out3, ref_score3 = attention_reference(x3_bf16, w1, b1, w2, b2)
    assert out3.dtype == jnp.bfloat16 and score3.dtype == jnp.bfloat16
    assert jnp.allclose(out3.astype(jnp.float32), ref_out3, atol=3e-2, rtol=3e-2)
    assert jnp.allclose(score3.astype(jnp.float32), ref_score3, atol=3e-2, rtol=3e-2)

    print("KERNEL_OK")
</pallas_src>

<mosaic_0001>
module attributes {stable_mosaic.version = 11 : i64} {
  func.func @attention_kernel(%arg0: i32, %arg1: memref<2x8x32xf32, #tpu.memory_space<vmem>>, %arg2: memref<32x16xf32, #tpu.memory_space<vmem>>, %arg3: memref<1x16xf32, #tpu.memory_space<vmem>>, %arg4: memref<1x16xf32, #tpu.memory_space<vmem>>, %arg5: memref<2x32xf32, #tpu.memory_space<vmem>>, %arg6: memref<2x8xf32, #tpu.memory_space<vmem>>) attributes {dimension_semantics = [#tpu.dimension_semantics<parallel>], iteration_bounds = array<i64: 1>, scalar_prefetch = 0 : i64, scratch_operands = 0 : i64, tpu.core_type = #tpu.core_type<tc>, window_params = [{transform_indices = @transform_0, window_bounds = array<i64: 2, 8, 32>}, {pipeline_mode = #tpu.pipeline_mode<synchronous>, transform_indices = @transform_1, window_bounds = array<i64: 32, 16>}, {pipeline_mode = #tpu.pipeline_mode<synchronous>, transform_indices = @transform_2, window_bounds = array<i64: 1, 16>}, {pipeline_mode = #tpu.pipeline_mode<synchronous>, transform_indices = @transform_3, window_bounds = array<i64: 1, 16>}, {transform_indices = @transform_4, window_bounds = array<i64: 2, 32>}, {transform_indices = @transform_5, window_bounds = array<i64: 2, 8>}]} {
    %c0 = arith.constant 0 : index
    %c0_0 = arith.constant 0 : index
    %c0_1 = arith.constant 0 : index
    %0 = vector.load %arg1[%c0, %c0_0, %c0_1] : memref<2x8x32xf32, #tpu.memory_space<vmem>>, vector<2x8x32xf32>
    %1 = vector.shape_cast %0 : vector<2x8x32xf32> to vector<16x32xf32>
    %c0_2 = arith.constant 0 : index
    %c0_3 = arith.constant 0 : index
    %2 = vector.load %arg2[%c0_2, %c0_3] : memref<32x16xf32, #tpu.memory_space<vmem>>, vector<32x16xf32>
    %cst = arith.constant dense<0.000000e+00> : vector<16x16xf32>
    %3 = tpu.matmul %1, %2, %cst {dimension_numbers = #tpu.dot_dimension_numbers<[1], [0], [0], [1], [0, 0, 1, 1], [], []>} : vector<16x32xf32>, vector<32x16xf32>, vector<16x16xf32> -> vector<16x16xf32>
    %c0_4 = arith.constant 0 : index
    %c0_5 = arith.constant 0 : index
    %4 = vector.load %arg3[%c0_4, %c0_5] : memref<1x16xf32, #tpu.memory_space<vmem>>, vector<1x16xf32>
    %5 = vector.broadcast %4 : vector<1x16xf32> to vector<16x16xf32>
    %6 = arith.addf %3, %5 : vector<16x16xf32>
    %7 = math.tanh %6 : vector<16x16xf32>
    %8 = vector.shape_cast %7 : vector<16x16xf32> to vector<2x8x16xf32>
    %c0_6 = arith.constant 0 : index
    %c0_7 = arith.constant 0 : index
    %9 = vector.load %arg4[%c0_6, %c0_7] : memref<1x16xf32, #tpu.memory_space<vmem>>, vector<1x16xf32>
    %10 = vector.shape_cast %9 : vector<1x16xf32> to vector<1x1x16xf32>
    %11 = vector.broadcast %10 : vector<1x1x16xf32> to vector<2x8x16xf32>
    %12 = arith.mulf %8, %11 : vector<2x8x16xf32>
    %cst_8 = arith.constant dense<0.000000e+00> : vector<2x8xf32>
    %13 = vector.multi_reduction <add>, %12, %cst_8 [2] : vector<2x8x16xf32> to vector<2x8xf32>
    %cst_9 = arith.constant dense<0xFF800000> : vector<2xf32>
    %14 = vector.multi_reduction <maximumf>, %13, %cst_9 [1] : vector<2x8xf32> to vector<2xf32>
    %15 = vector.shape_cast %14 : vector<2xf32> to vector<2x1xf32>
    %16 = vector.broadcast %15 : vector<2x1xf32> to vector<2x8xf32>
    %17 = arith.subf %13, %16 : vector<2x8xf32>
    %18 = math.exp %17 : vector<2x8xf32>
    %cst_10 = arith.constant dense<0.000000e+00> : vector<2xf32>
    %19 = vector.multi_reduction <add>, %18, %cst_10 [1] : vector<2x8xf32> to vector<2xf32>
    %20 = vector.shape_cast %19 : vector<2xf32> to vector<2x1xf32>
    %21 = vector.broadcast %20 : vector<2x1xf32> to vector<2x8xf32>
    %22 = arith.divf %18, %21 : vector<2x8xf32>
    %23 = vector.shape_cast %22 : vector<2x8xf32> to vector<2x8x1xf32>
    %24 = vector.broadcast %23 : vector<2x8x1xf32> to vector<2x8x32xf32>
    %25 = arith.mulf %0, %24 : vector<2x8x32xf32>
    %cst_11 = arith.constant dense<0.000000e+00> : vector<2x32xf32>
    %26 = vector.multi_reduction <add>, %25, %cst_11 [1] : vector<2x8x32xf32> to vector<2x32xf32>
    %c0_12 = arith.constant 0 : index
    %c0_13 = arith.constant 0 : index
    %27 = vector.load %arg5[%c0_12, %c0_13] : memref<2x32xf32, #tpu.memory_space<vmem>>, vector<2x32xf32>
    tpu.vector_store %arg5[%c0_12, %c0_13], %26 {strides = array<i32>} : memref<2x32xf32, #tpu.memory_space<vmem>>, vector<2x32xf32>,
    %c0_14 = arith.constant 0 : index
    %c0_15 = arith.constant 0 : index
    %28 = vector.load %arg6[%c0_14, %c0_15] : memref<2x8xf32, #tpu.memory_space<vmem>>, vector<2x8xf32>
    tpu.vector_store %arg6[%c0_14, %c0_15], %22 {strides = array<i32>} : memref<2x8xf32, #tpu.memory_space<vmem>>, vector<2x8xf32>,
    return
  }
  func.func @transform_0(%arg0: i32) -> (i32, i32, i32) {
    %c0_i32 = arith.constant 0 : i32
    %c0_i32_0 = arith.constant 0 : i32
    %c0_i32_1 = arith.constant 0 : i32
    return %arg0, %c0_i32, %c0_i32_0 : i32, i32, i32
  }
  func.func @transform_1(%arg0: i32) -> (i32, i32) {
    %c0_i32 = arith.constant 0 : i32
    %c0_i32_0 = arith.constant 0 : i32
    %c0_i32_1 = arith.constant 0 : i32
    return %c0_i32, %c0_i32_0 : i32, i32
  }
  func.func @transform_2(%arg0: i32) -> (i32, i32) {
    %c0_i32 = arith.constant 0 : i32
    %c0_i32_0 = arith.constant 0 : i32
    %c0_i32_1 = arith.constant 0 : i32
    return %c0_i32, %c0_i32_0 : i32, i32
  }
  func.func @transform_3(%arg0: i32) -> (i32, i32) {
    %c0_i32 = arith.constant 0 : i32
    %c0_i32_0 = arith.constant 0 : i32
    %c0_i32_1 = arith.constant 0 : i32
    return %c0_i32, %c0_i32_0 : i32, i32
  }
  func.func @transform_4(%arg0: i32) -> (i32, i32) {
    %c0_i32 = arith.constant 0 : i32
    %c0_i32_0 = arith.constant 0 : i32
    return %arg0, %c0_i32 : i32, i32
  }
  func.func @transform_5(%arg0: i32) -> (i32, i32) {
    %c0_i32 = arith.constant 0 : i32
    %c0_i32_0 = arith.constant 0 : i32
    return %arg0, %c0_i32 : i32, i32
  }
}

</mosaic_0001>

<bundles_post_ra>
// kernel: tpu_custom_call.1
= control target key start
LH: loop header
LB: loop body
LE: loop exit
PB: predicated region body
PF: predicated region fallthrough
CT: control target
= control target key end

     0   :  { %11 = vsyncpa [#allocation3], 0  ;;  %vm34_vm0 = vcmask 261120   ;;  %s441_s0 = inlined_call_operand.vmem [shape: f32[2,8,32], index: 0, kind: input, shape index: {}]   ;;  %s442_s1 = inlined_call_operand.vmem [shape: f32[32,16], index: 1, kind: input, shape index: {}]   ;;  %s443_s2 = inlined_call_operand.vmem [shape: f32[1,16], index: 2, kind: input, shape index: {}]   ;;  %s444_s3 = inlined_call_operand.vmem [shape: f32[1,16], index: 3, kind: input, shape index: {}]   ;;  %s445_s4 = inlined_call_operand.hbm [shape: f32[2,32], index: 4, kind: output, shape index: {0}]   ;;  %s446_s5 = inlined_call_operand.hbm [shape: f32[2,8], index: 5, kind: output, shape index: {1}]  }
   0x1   :  { %v26_v0 = vld [vmem:[%s442_s1 + $0x18] sm:$0xff]  ;;  %v25_v1 = vld [vmem:[%s442_s1 + $0x10] sm:$0xff]  ;;  %v401_v2 = vld [vmem:[%s441_s0] sm:$0xff] }
   0x2   :  { %287 = vmatprep.subr.mxu0 %v26_v0  ;;  %v24_v3 = vld [vmem:[%s442_s1 + $0x8] sm:$0xff]  ;;  %295 = vmatprep.mubr.msk.f32.mxu0 %vm34_vm0, %v401_v2 }
   0x3   :  { %288 = vmatpush3.msra.mxu0 %v26_v0 }
   0x4   :  { %12 = vsyncpa [#allocation5], 0  ;;  %289 = vmatprep.subr.mxu0 %v25_v1  ;;  %v23_v4 = vld [vmem:[%s442_s1] sm:$0xff]  ;;  %v414_v5 = vld [vmem:[%s441_s0 + $0x8] sm:$0xff]  ;;  %vm127_vm1 = vcmask 130048   ;;  %v136_v18 = vlaneseq  ;;  %vm146_vm2 = vcmask 1041409  }
   0x5   :  { %290 = vmatpush3.msra.mxu0 %v25_v1  ;;  %v277_v6 = vld [vmem:[%s443_s2] ss:$0 sm:$0xff]  ;;  %vm149_vm3 = vcmask 58368   ;;  %v359_v28 = vmov 0   ;;  %s360_s2 = smov [#allocation4]  }
   0x6   :  { %291 = vmatprep.subr.mxu0 %v24_v3  ;;  %v280_v13 = vld [vmem:[%s444_s3] ss:$0 sm:$0xff]  ;;  %v137_v19 = vand.u32 127, %v136_v18  ;;  %v139_v20 = vshrl.u32 %v136_v18, 7  ;;  %302 = vset.pattern.permute.xlu0 %v359_v28  ;;  %s265_s3 = sshll.u32 %s360_s2, 4  ;;  %s266_s3 = int_to_ptr.vmem [resolvable:$true] %s265_s3 }
   0x7   :  { %292 = vmatpush3.msra.mxu0 %v24_v3  ;;  %301 = vset.pattern.permute.xlu1 %v359_v28  ;;  %s315_s7 = scalar_lea.vmem %s266_s3, 32  ;;  %p320_p1 = scmp.lt.s32.totalorder %s266_s3, %s266_s3 }
   0x8   :  { %293 = vmatprep.subr.mxu0 %v23_v4  ;;  %v140_v22 = vsub.s32 %v137_v19, %v139_v20  ;;  %v156_v29 = vsub.s32 0, %v139_v20  ;;  %v160_v30 = vsub.s32 1, %v139_v20  ;;  %p316_p0 = scmp.ne.s32.totalorder %s266_s3, %s315_s7  ;;  %p321_p2 = scmp.lt.s32.totalorder %s315_s7, %s315_s7 }
   0x9   :  { %294 = vmatpush3.msra.mxu0 %v23_v4 }
   0xa   :  { %296 = vmatmul.mubr.msk.f32.vlgmr.msra.gmra.mxu0 %vm34_vm0, %v414_v5  ;;  %p322_p3 = por %p321_p2, %p320_p1 }
   0xc   :  { %p323_p4 = pnand %p322_p3, %p316_p0 }
  0xca   :  { %v297_v7 = vpop.f32.mrf.mxu0 }
  0xcb   :  { %v113_v8 = vadd.f32 %v297_v7, %v277_v6 }
  0xcc   :  { %v107_v9 = vpop.f32.mrf.mxu0 }
  0xcd   :  { %v108_v10 = vadd.f32 %v277_v6, %v107_v9  ;;  %303 = vtanh.f32 %v113_v8 }
  0xcf   :  { %305 = vtanh.f32 %v108_v10 }
  0xda   :  { %v304_v11 = vpop.eup %303 }
  0xdb   :  { %v126_v16 = vmul.f32 %v304_v11, %v280_v13 }
  0xdc   :  { %v306_v12 = vpop.eup %305 }
  0xdd   :  { %v125_v14 = vmul.f32 %v306_v12, %v280_v13  ;;  %v131_v17 = vsel %vm127_vm1, %v126_v16, 0.0 }
  0xdf   :  { %v128_v15 = vsel %vm127_vm1, %v125_v14, 0.0 }
  0xe0   :  { %129 = vadd.xlane.f32.xlu0 %v128_v15 }
  0xe4   :  { %132 = vadd.xlane.f32.xlu0 %v131_v17 }
 0x169   :  { %v130_v21 = vpop.xlane.xlu0 %129 }
 0x16a   :  { %v141_v24 = vrot.slane %v130_v21, %v140_v22 }
 0x16d   :  { %v133_v23 = vpop.xlane.xlu0 %132 }
 0x16e   :  { %v145_v25 = vrot.slane %v133_v23, %v140_v22 }
 0x170   :  { %v147_v26 = vsel %vm146_vm2, %v145_v25, %v141_v24 }
 0x171   :  { %v150_v27 = vsel %vm149_vm3, %v147_v26, -inf }
 0x172   :  { %151 = vmax.xlane.f32.xlu1 %v150_v27 }
 0x1fb   :  { %v152_v31 = vpop.xlane.xlu1 %151 }
 0x1fc   :  { %v157_v32 = vrot.slane %v152_v31, %v156_v29  ;;  %v161_v33 = vrot.slane %v152_v31, %v160_v30 }
 0x1fe   :  { %v164_v34 = vsub.f32 %v130_v21, %v157_v32  ;;  %v165_v35 = vsub.f32 %v133_v23, %v161_v33 }
 0x200   :  { %v166_v36 = vmul.f32 1.442695, %v164_v34  ;;  %v168_v37 = vmul.f32 1.442695, %v165_v35 }
 0x202   :  { %307 = vpow2.f32 %v166_v36 }
 0x203   :  { %309 = vpow2.f32 %v168_v37 }
 0x20f   :  { %v308_v38 = vpop.eup %307 }
 0x210   :  { %v310_v39 = vpop.eup %309  ;;  %173 = vperm.xlu1 %301, %v308_v38  }
 0x211   :  { %176 = vperm.xlu0 %302, %v310_v39  }
 0x28b   :  { %v174_v40 = vpop.permute.xlu1 %173 }
 0x28c   :  { %v177_v41 = vpop.permute.xlu0 %176  ;;  %v181_v42 = vrot.slane %v174_v40, %v140_v22 }
 0x28d   :  { %v185_v43 = vrot.slane %v177_v41, %v140_v22 }
 0x28f   :  { %v186_v44 = vsel %vm146_vm2, %v185_v43, %v181_v42 }
 0x290   :  { %v188_v45 = vsel %vm149_vm3, %v186_v44, 0.0 }
 0x291   :  { %189 = vadd.xlane.f32.xlu1 %v188_v45 }
 0x31a   :  { %v190_v46 = vpop.xlane.xlu1 %189 }
 0x31b   :  { %v195_v47 = vrot.slane %v190_v46, %v156_v29  ;;  %v199_v48 = vrot.slane %v190_v46, %v160_v30 }
 0x31d   :  { %311 = vrcp.f32 %v195_v47 }
 0x31e   :  { %313 = vrcp.f32 %v199_v48 }
 0x32a   :  { %v312_v49 = vpop.eup %311 }
 0x32b   :  { %v203_v50 = vmul.f32 %v312_v49, %v308_v38  ;;  %v314_v51 = vpop.eup %313 }
 0x32c   :  { %v205_v52 = vmul.f32 %v314_v51, %v310_v39 }
 0x32d   :  { %208 = vperm.xlu0 %302, %v203_v50  }
 0x331   :  { %213 = vperm.xlu0 %302, %v205_v52  }
 0x3a8   :  { %v209_v53 = vpop.permute.xlu0 %208 }
 0x3a9   :  { %v216_v54 = vmul.f32 %v209_v53, %v401_v2  ;;  %v241_v58 = vrot.slane %v209_v53, %v140_v22 }
 0x3ab   :  { %v218_v55 = vsel %vm34_vm0, %v216_v54, 0.0 }
 0x3ac   :  { %v219_v56 = vrot.slane %v218_v55, 4  ;;  %v214_v57 = vpop.permute.xlu0 %213 }
 0x3ad   :  { %v217_v59 = vmul.f32 %v214_v57, %v414_v5  ;;  %v245_v60 = vrot.slane %v214_v57, %v140_v22 }
 0x3ae   :  { %v220_v61 = vadd.f32 %v219_v56, %v218_v55 }
 0x3af   :  { %v225_v62 = vsel %vm34_vm0, %v217_v59, 0.0  ;;  %v246_v63 = vsel %vm146_vm2, %v245_v60, %v241_v58 }
 0x3b0   :  { %v221_v0 = vrot.slane %v220_v61, 2  ;;  %v226_v1 = vrot.slane %v225_v62, 4  ;;  %248 = vst.msk [vmem:[#allocation4] sm:$0x3] %vm149_vm3, %v246_v63 }
 0x3b1   :  { %326 = shalt.err (!%p323_p4)
}
 0x3b2   :  { %268 = dma.vmem_to_hbm [thread:$0]  %s266_s3, 32, %s446_s5, [#allocation5]   ;;  %v222_v2 = vadd.f32 %v221_v0, %v220_v61  ;;  %v227_v3 = vadd.f32 %v226_v1, %v225_v62  ;;  %vm236_vm4 = vcmask 254976  }
 0x3b3   :  { %s361_s10 = smov [#allocation2]  }
 0x3b4   :  { %v228_v4 = vrot.slane %v227_v3, 2  ;;  %v223_v6 = vrot.slane %v222_v2, 1  ;;  %s255_s11 = sshll.u32 %s361_s10, 4  ;;  %s256_s11 = int_to_ptr.vmem [resolvable:$true] %s255_s11 }
 0x3b5   :  { %s335_s12 = scalar_lea.vmem %s256_s11, 32  ;;  %p340_p6 = scmp.lt.s32.totalorder %s256_s11, %s256_s11 }
 0x3b6   :  { %v229_v5 = vadd.f32 %v228_v4, %v227_v3  ;;  %v224_v8 = vadd.f32 %v223_v6, %v222_v2  ;;  %p336_p5 = scmp.ne.s32.totalorder %s256_s11, %s335_s12  ;;  %p341_p7 = scmp.lt.s32.totalorder %s335_s12, %s335_s12 }
 0x3b8   :  { %v230_v7 = vrot.slane %v229_v5, 1  ;;  %p342_p8 = por %p341_p7, %p340_p6 }
 0x3ba   :  { %v231_v9 = vadd.f32 %v230_v7, %v229_v5  ;;  %p343_p9 = pnand %p342_p8, %p336_p5 }
 0x3bc   :  { %v234_v10 = vsel %vm146_vm2, %v231_v9, %v224_v8 }
 0x3bd   :  { %237 = vst.msk [vmem:[#allocation2] sm:$0x3] %vm236_vm4, %v234_v10 }
 0x3be   :  { %346 = shalt.err (!%p343_p9)
}
 0x3bf   :  { %258 = dma.vmem_to_hbm [thread:$0]  %s256_s11, 32, %s445_s4, [#allocation3]  }
 0x3c0   :  { %355 = dma.done.wait [#allocation3], 32  }
 0x3c1   :  { %356 = vsyncadd [#allocation3], 4294967264 }
 0x3c2   :  { %357 = dma.done.wait [#allocation5], 32  }
 0x3c3   :  { %358 = vsyncadd [#allocation5], 4294967264 }
 0x3c4   :  { %275 = vsyncpa [#allocation3], 1 }
 0x3c5   :  { %276 = vsyncpa [#allocation5], 1 }

</bundles_post_ra>
